<compile_context>
chip_gen: v7x
topology: tpu7x:2x2x1
jax: 0.10.0
libtpu: 0.0.40
codegen_flags: <defaults>
</compile_context>

<pallas_src>
import jax
import jax.numpy as jnp
from jax.experimental import pallas as pl
from jax.experimental.pallas import tpu as pltpu

_NEG_BIG = -1e30  # finite "minus infinity" for masking padded logit columns


def _make_kernel(n_true, tile_n, c_d, c_g):
    """Builds the fused GanLoss kernel for static sizes."""

    def kernel(x_ref, w_ref, b_ref, lab_ref, partial_ref):
        i = pl.program_id(0)

        # One lane-dense matmul for both heads: (tile_n, c_pad) f32 logits.
        logits = jnp.dot(x_ref[...], w_ref[...],
                         preferred_element_type=jnp.float32) + b_ref[...]
        tn, c_pad = logits.shape

        col = jax.lax.broadcasted_iota(jnp.int32, (tn, c_pad), 1)
        row = jax.lax.broadcasted_iota(jnp.int32, (tn, 1), 0)
        # Rows past the true batch size (ragged last tile) are invalid.
        row_valid = (i * tile_n + row) < n_true  # (tn, 1) bool

        # Zero invalid rows' logits so undefined tail memory can never inject
        # NaN/Inf into the exp/log below (their loss is select-masked anyway).
        logits = jnp.where(row_valid, logits, 0.0)

        labs = lab_ref[...]  # (tn, 2) int32: col 0 = domain label, col 1 = class label

        def head_ce_sum(lo, hi, labels_col):
            # Columns [lo, hi) belong to this head; everything else (other
            # head + 128-lane padding) is masked out of the logsumexp.
            in_head = (col >= lo) & (col < hi)
            ml = jnp.where(in_head, logits, _NEG_BIG)
            m = jnp.max(ml, axis=-1, keepdims=True)
            lse = jnp.log(jnp.sum(jnp.exp(ml - m), axis=-1, keepdims=True)) + m
            # Select-based gather of the target logit (no one-hot materialization).
            picked = jnp.sum(
                jnp.where(col == (labels_col + lo), logits, 0.0),
                axis=-1, keepdims=True)
            per_row = jnp.where(row_valid, lse - picked, 0.0)
            return jnp.sum(per_row)

        d_sum = head_ce_sum(0, c_d, labs[:, 0:1])          # domain head
        g_sum = head_ce_sum(c_d, c_d + c_g, labs[:, 1:2])  # class head

        # Lane-dense (1, 1, 128) partial-sum block: lane 0 = lossD, lane 1 = lossG.
        lane = jax.lax.broadcasted_iota(jnp.int32, (1, 1, 128), 2)
        partial_ref[...] = jnp.where(lane == 0, d_sum,
                                     jnp.where(lane == 1, g_sum, 0.0))

    return kernel


def _vmem_capacity_bytes():
    try:
        return int(pltpu.get_tpu_info().vmem_capacity_bytes)
    except Exception:
        return 64 * 1024 * 1024  # conservative: v7x per-TensorCore VMEM


def _sublane_align(itemsize):
    # Sublane packing of the streamed x tile: f32 -> 8, bf16 -> 16, int8/fp8 -> 32.
    return {4: 8, 2: 16, 1: 32}.get(int(itemsize), 8)


def _auto_tile_n(n, d, c_pad, itemsize, vmem_cap):
    """Biggest batch tile that fits the VMEM budget, >= 2 grid steps if possible."""
    sub = _sublane_align(itemsize)
    if n <= sub:
        return n  # single tile equal to the full (tiny) batch

    budget = int(0.55 * vmem_cap)
    resident = d * c_pad * itemsize + 128 * 4          # fused weights + bias (resident)
    per_row = (2 * d * itemsize                        # double-buffered x block
               + 6 * c_pad * 4                         # logits / mask f32 temporaries
               + 2 * 2 * 4)                            # double-buffered (.,2) int32 labels
    t_vmem = max(sub, (budget - 2 * resident) // per_row)
    t_split = max(sub, -(-n // 2))                     # >= 2 tiles -> both v7x TCs busy
    t = min(1024, int(t_vmem), t_split, n)
    t = max(sub, (t // sub) * sub)
    return int(t)


def _pallas_partials(x, w_fused, b_fused, labs, *, n_true, tile_n, c_d, c_g,
                     num_tiles, vmem_limit, cost, single_buffer_weights):
    d = x.shape[1]
    c_pad = w_fused.shape[1]
    kernel = _make_kernel(n_true, tile_n, c_d, c_g)

    if single_buffer_weights:
        # Constant index_map -> no refetch; single-buffer to reclaim VMEM (v7x).
        w_spec = pl.BlockSpec((d, c_pad), lambda i: (0, 0),
                              pipeline_mode=pl.Buffered(1))
        b_spec = pl.BlockSpec((1, c_pad), lambda i: (0, 0),
                              pipeline_mode=pl.Buffered(1))
    else:
        w_spec = pl.BlockSpec((d, c_pad), lambda i: (0, 0))
        b_spec = pl.BlockSpec((1, c_pad), lambda i: (0, 0))

    return pl.pallas_call(
        kernel,
        out_shape=jax.ShapeDtypeStruct((num_tiles, 1, 128), jnp.float32),
        grid=(num_tiles,),
        in_specs=[
            pl.BlockSpec((tile_n, d), lambda i: (i, 0)),   # x tile (streamed)
            w_spec,                                        # fused weights (resident)
            b_spec,                                        # fused bias (resident)
            pl.BlockSpec((tile_n, 2), lambda i: (i, 0)),   # fused labels (streamed)
        ],
        out_specs=pl.BlockSpec((1, 1, 128), lambda i: (i, 0, 0)),
        compiler_params=pltpu.CompilerParams(
            dimension_semantics=("parallel",),
            vmem_limit_bytes=vmem_limit),
        cost_estimate=cost,
    )(x, w_fused, b_fused, labs)


def gan_loss(x, wD, bD, wG, bG, domain_lab, labels, *, tile_n=None):
    """Fused GanLoss forward.

    x:          (N, D) features
    wD, bD:     (D, C_D), (C_D,)   domain head (C_D = outDim, typically 2)
    wG, bG:     (D, C_G), (C_G,)   class head  (C_G = numClasses)
    domain_lab: (N,) int labels for the domain head
    labels:     (N,) int labels for the class head
    Returns (lossDomain, lossCls) scalars (mean cross-entropy each).
    """
    n, d = x.shape
    c_d = int(wD.shape[1])
    c_g = int(wG.shape[1])
    c_total = c_d + c_g
    c_pad = max(128, ((c_total + 127) // 128) * 128)
    itemsize = x.dtype.itemsize
    vmem_cap = _vmem_capacity_bytes()

    if tile_n is None:
        tile_n = _auto_tile_n(n, d, c_pad, itemsize, vmem_cap)
    sub = _sublane_align(itemsize)
    assert tile_n == n or tile_n % sub == 0, (
        f"tile_n must equal N or be a multiple of {sub} for dtype {x.dtype}")

    num_tiles = pl.cdiv(n, tile_n)  # ragged last tile handled in-kernel (no jnp.pad)

    # Fuse the two heads into one lane-dense weight slab (+ f32 bias row).
    w_fused = jnp.zeros((d, c_pad), dtype=wD.dtype)
    w_fused = w_fused.at[:, :c_d].set(wD).at[:, c_d:c_total].set(wG)
    b_fused = jnp.zeros((1, c_pad), dtype=jnp.float32)
    b_fused = (b_fused.at[:, :c_d].set(bD.astype(jnp.float32).reshape(1, c_d))
                       .at[:, c_d:c_total].set(bG.astype(jnp.float32).reshape(1, c_g)))

    # Merge both label vectors into one (N, 2) int32 input (single DMA per step).
    labs = jnp.stack([domain_lab.astype(jnp.int32),
                      labels.astype(jnp.int32)], axis=1)

    # VMEM budget for this tile; cap at 80% of this generation's physical VMEM.
    vmem_need = (
        2 * tile_n * d * itemsize                 # double-buffered x blocks
        + 2 * d * c_pad * w_fused.dtype.itemsize  # fused weights (worst case 2 bufs)
        + 2 * c_pad * 4                           # bias
        + 2 * tile_n * 2 * 4                      # label blocks
        + 2 * 1 * 128 * 4                         # partial-sum output block
        + 6 * tile_n * c_pad * 4                  # logits / mask temporaries
    )
    vmem_limit = int(min(max(2 * vmem_need, 16 * 1024 * 1024),
                         int(0.8 * vmem_cap)))

    cost = pl.CostEstimate(
        flops=int(2 * n * d * c_pad + 8 * n * c_pad),
        transcendentals=int(2 * n * c_pad),
        bytes_accessed=int(n * d * itemsize
                           + d * c_pad * w_fused.dtype.itemsize
                           + c_pad * 4 + n * 2 * 4
                           + num_tiles * 128 * 4),
    )

    kwargs = dict(n_true=n, tile_n=tile_n, c_d=c_d, c_g=c_g,
                  num_tiles=num_tiles, vmem_limit=vmem_limit, cost=cost)
    try:
        partials = _pallas_partials(x, w_fused, b_fused, labs,
                                    single_buffer_weights=True, **kwargs)
        jax.block_until_ready(partials)
    except Exception:
        # Fallback if this JAX build rejects pipeline_mode=pl.Buffered(1).
        partials = _pallas_partials(x, w_fused, b_fused, labs,
                                    single_buffer_weights=False, **kwargs)

    # Finalize: sum per-tile partial sums and divide by the true batch size.
    sums = jnp.sum(partials[:, 0, :], axis=0)  # (128,)
    loss_domain = sums[0] / jnp.float32(n)
    loss_cls = sums[1] / jnp.float32(n)
    return loss_domain, loss_cls


def _reference(x, wD, bD, wG, bG, dlab, glab):
    def ce(logits, lab):
        logz = jax.nn.log_softmax(logits.astype(jnp.float32), axis=-1)
        return -jnp.mean(jnp.take_along_axis(logz, lab[:, None], axis=-1))
    dsc = x @ wD + bD
    gsc = x @ wG + bG
    return ce(dsc, dlab), ce(gsc, glab)


if __name__ == "__main__":
    # Small synthetic shapes consistent with the module's forward
    # (inDim scaled down from 2048; modelD/modelG as Linear heads).
    # N=50 deliberately exercises the ragged final tile (no host-side padding).
    N = 50            # batch
    IN_DIM = 32       # feature dim (inDim)
    OUT_DIM_D = 2     # domain classes (outDim=2)
    NUM_CLASSES = 4   # identity classes for modelG

    key = jax.random.PRNGKey(0)
    kx, kwd, kbd, kwg, kbg, kdl, kgl = jax.random.split(key, 7)

    x = jax.random.normal(kx, (N, IN_DIM), dtype=jnp.float32)

    wD = 0.1 * jax.random.normal(kwd, (IN_DIM, OUT_DIM_D), dtype=jnp.float32)
    bD = 0.01 * jax.random.normal(kbd, (OUT_DIM_D,), dtype=jnp.float32)
    wG = 0.1 * jax.random.normal(kwg, (IN_DIM, NUM_CLASSES), dtype=jnp.float32)
    bG = 0.01 * jax.random.normal(kbg, (NUM_CLASSES,), dtype=jnp.float32)

    domain_lab = jax.random.randint(kdl, (N,), 0, OUT_DIM_D, dtype=jnp.int32)
    labels = jax.random.randint(kgl, (N,), 0, NUM_CLASSES, dtype=jnp.int32)

    loss_domain, loss_cls = gan_loss(x, wD, bD, wG, bG, domain_lab, labels)
    jax.block_until_ready((loss_domain, loss_cls))

    ref_d, ref_c = _reference(x, wD, bD, wG, bG, domain_lab, labels)
    assert jnp.allclose(loss_domain, ref_d, atol=1e-5), (loss_domain, ref_d)
    assert jnp.allclose(loss_cls, ref_c, atol=1e-5), (loss_cls, ref_c)

    print("KERNEL_OK")
</pallas_src>

<mosaic_0001>
module attributes {stable_mosaic.version = 11 : i64} {
  func.func @kernel(%arg0: i32, %arg1: memref<24x32xf32, #tpu.memory_space<vmem>>, %arg2: memref<32x128xf32, #tpu.memory_space<vmem>>, %arg3: memref<1x128xf32, #tpu.memory_space<vmem>>, %arg4: memref<24x2xi32, #tpu.memory_space<vmem>>, %arg5: memref<1x1x128xf32, #tpu.memory_space<vmem>>) attributes {dimension_semantics = [#tpu.dimension_semantics<parallel>], iteration_bounds = array<i64: 3>, scalar_prefetch = 0 : i64, scratch_operands = 0 : i64, tpu.core_type = #tpu.core_type<tc>, window_params = [{transform_indices = @transform_0, window_bounds = array<i64: 24, 32>}, {pipeline_mode = #tpu.pipeline_mode<synchronous>, transform_indices = @transform_1, window_bounds = array<i64: 32, 128>}, {pipeline_mode = #tpu.pipeline_mode<synchronous>, transform_indices = @transform_2, window_bounds = array<i64: 1, 128>}, {transform_indices = @transform_3, window_bounds = array<i64: 24, 2>}, {transform_indices = @transform_4, window_bounds = array<i64: 1, 1, 128>}]} {
    %c0 = arith.constant 0 : index
    %c0_0 = arith.constant 0 : index
    %0 = vector.load %arg1[%c0, %c0_0] : memref<24x32xf32, #tpu.memory_space<vmem>>, vector<24x32xf32>
    %c0_1 = arith.constant 0 : index
    %c0_2 = arith.constant 0 : index
    %1 = vector.load %arg2[%c0_1, %c0_2] : memref<32x128xf32, #tpu.memory_space<vmem>>, vector<32x128xf32>
    %cst = arith.constant dense<0.000000e+00> : vector<24x128xf32>
    %2 = tpu.matmul %0, %1, %cst {dimension_numbers = #tpu.dot_dimension_numbers<[1], [0], [0], [1], [0, 0, 1, 1], [], []>} : vector<24x32xf32>, vector<32x128xf32>, vector<24x128xf32> -> vector<24x128xf32>
    %c0_3 = arith.constant 0 : index
    %c0_4 = arith.constant 0 : index
    %3 = vector.load %arg3[%c0_3, %c0_4] : memref<1x128xf32, #tpu.memory_space<vmem>>, vector<1x128xf32>
    %4 = vector.broadcast %3 : vector<1x128xf32> to vector<24x128xf32>
    %5 = arith.addf %2, %4 : vector<24x128xf32>
    %6 = tpu.iota {dimensions = array<i32: 1>} : vector<24x128xi32>
    %7 = tpu.iota {dimensions = array<i32: 0>} : vector<24x1xi32>
    %c24_i32 = arith.constant 24 : i32
    %8 = arith.muli %arg0, %c24_i32 : i32
    %9 = vector.broadcast %8 : i32 to vector<24x1xi32>
    %10 = arith.addi %9, %7 : vector<24x1xi32>
    %c50_i32 = arith.constant 50 : i32
    %11 = vector.broadcast %c50_i32 : i32 to vector<24x1xi32>
    %12 = arith.cmpi slt, %10, %11 : vector<24x1xi32>
    %cst_5 = arith.constant 0.000000e+00 : f32
    %13 = vector.shape_cast %12 : vector<24x1xi1> to vector<24x1xi1>
    %14 = vector.broadcast %13 : vector<24x1xi1> to vector<24x128xi1>
    %15 = vector.broadcast %cst_5 : f32 to vector<24x128xf32>
    %16 = arith.select %14, %5, %15 : vector<24x128xi1>, vector<24x128xf32>
    %c0_6 = arith.constant 0 : index
    %c0_7 = arith.constant 0 : index
    %17 = vector.load %arg4[%c0_6, %c0_7] : memref<24x2xi32, #tpu.memory_space<vmem>>, vector<24x2xi32>
    %18 = vector.extract_strided_slice %17 {offsets = [0, 0], sizes = [24, 1], strides = [1, 1]} : vector<24x2xi32> to vector<24x1xi32>
    %c0_i32 = arith.constant 0 : i32
    %19 = vector.broadcast %c0_i32 : i32 to vector<24x128xi32>
    %20 = arith.cmpi sge, %6, %19 : vector<24x128xi32>
    %c2_i32 = arith.constant 2 : i32
    %21 = vector.broadcast %c2_i32 : i32 to vector<24x128xi32>
    %22 = arith.cmpi slt, %6, %21 : vector<24x128xi32>
    %23 = arith.andi %20, %22 : vector<24x128xi1>
    %cst_8 = arith.constant -1.000000e+30 : f32
    %24 = vector.broadcast %cst_8 : f32 to vector<24x128xf32>
    %25 = arith.select %23, %16, %24 : vector<24x128xi1>, vector<24x128xf32>
    %cst_9 = arith.constant dense<0xFF800000> : vector<24xf32>
    %26 = vector.multi_reduction <maximumf>, %25, %cst_9 [1] : vector<24x128xf32> to vector<24xf32>
    %27 = vector.shape_cast %26 : vector<24xf32> to vector<24x1xf32>
    %28 = vector.broadcast %27 : vector<24x1xf32> to vector<24x128xf32>
    %29 = arith.subf %25, %28 : vector<24x128xf32>
    %30 = math.exp %29 : vector<24x128xf32>
    %cst_10 = arith.constant dense<0.000000e+00> : vector<24xf32>
    %31 = vector.multi_reduction <add>, %30, %cst_10 [1] : vector<24x128xf32> to vector<24xf32>
    %32 = vector.shape_cast %31 : vector<24xf32> to vector<24x1xf32>
    %33 = math.log %32 : vector<24x1xf32>
    %34 = arith.addf %33, %27 : vector<24x1xf32>
    %c0_i32_11 = arith.constant 0 : i32
    %35 = vector.broadcast %c0_i32_11 : i32 to vector<24x1xi32>
    %36 = arith.addi %18, %35 : vector<24x1xi32>
    %37 = vector.broadcast %36 : vector<24x1xi32> to vector<24x128xi32>
    %38 = arith.cmpi eq, %6, %37 : vector<24x128xi32>
    %cst_12 = arith.constant 0.000000e+00 : f32
    %39 = vector.broadcast %cst_12 : f32 to vector<24x128xf32>
    %40 = arith.select %38, %16, %39 : vector<24x128xi1>, vector<24x128xf32>
    %cst_13 = arith.constant dense<0.000000e+00> : vector<24xf32>
    %41 = vector.multi_reduction <add>, %40, %cst_13 [1] : vector<24x128xf32> to vector<24xf32>
    %42 = vector.shape_cast %41 : vector<24xf32> to vector<24x1xf32>
    %43 = arith.subf %34, %42 : vector<24x1xf32>
    %cst_14 = arith.constant 0.000000e+00 : f32
    %44 = vector.broadcast %cst_14 : f32 to vector<24x1xf32>
    %45 = arith.select %12, %43, %44 : vector<24x1xi1>, vector<24x1xf32>
    %46 = vector.shape_cast %45 : vector<24x1xf32> to vector<1x24x1xf32>
    %cst_15 = arith.constant dense<0.000000e+00> : vector<1xf32>
    %47 = vector.multi_reduction <add>, %46, %cst_15 [1, 2] : vector<1x24x1xf32> to vector<1xf32>
    %48 = vector.shape_cast %47 : vector<1xf32> to vector<1x1x1xf32>
    %49 = vector.extract %48[0, 0, 0] : f32 from vector<1x1x1xf32>
    %50 = vector.extract_strided_slice %17 {offsets = [0, 1], sizes = [24, 1], strides = [1, 1]} : vector<24x2xi32> to vector<24x1xi32>
    %c2_i32_16 = arith.constant 2 : i32
    %51 = vector.broadcast %c2_i32_16 : i32 to vector<24x128xi32>
    %52 = arith.cmpi sge, %6, %51 : vector<24x128xi32>
    %c6_i32 = arith.constant 6 : i32
    %53 = vector.broadcast %c6_i32 : i32 to vector<24x128xi32>
    %54 = arith.cmpi slt, %6, %53 : vector<24x128xi32>
    %55 = arith.andi %52, %54 : vector<24x128xi1>
    %cst_17 = arith.constant -1.000000e+30 : f32
    %56 = vector.broadcast %cst_17 : f32 to vector<24x128xf32>
    %57 = arith.select %55, %16, %56 : vector<24x128xi1>, vector<24x128xf32>
    %cst_18 = arith.constant dense<0xFF800000> : vector<24xf32>
    %58 = vector.multi_reduction <maximumf>, %57, %cst_18 [1] : vector<24x128xf32> to vector<24xf32>
    %59 = vector.shape_cast %58 : vector<24xf32> to vector<24x1xf32>
    %60 = vector.broadcast %59 : vector<24x1xf32> to vector<24x128xf32>
    %61 = arith.subf %57, %60 : vector<24x128xf32>
    %62 = math.exp %61 : vector<24x128xf32>
    %cst_19 = arith.constant dense<0.000000e+00> : vector<24xf32>
    %63 = vector.multi_reduction <add>, %62, %cst_19 [1] : vector<24x128xf32> to vector<24xf32>
    %64 = vector.shape_cast %63 : vector<24xf32> to vector<24x1xf32>
    %65 = math.log %64 : vector<24x1xf32>
    %66 = arith.addf %65, %59 : vector<24x1xf32>
    %c2_i32_20 = arith.constant 2 : i32
    %67 = vector.broadcast %c2_i32_20 : i32 to vector<24x1xi32>
    %68 = arith.addi %50, %67 : vector<24x1xi32>
    %69 = vector.broadcast %68 : vector<24x1xi32> to vector<24x128xi32>
    %70 = arith.cmpi eq, %6, %69 : vector<24x128xi32>
    %cst_21 = arith.constant 0.000000e+00 : f32
    %71 = vector.broadcast %cst_21 : f32 to vector<24x128xf32>
    %72 = arith.select %70, %16, %71 : vector<24x128xi1>, vector<24x128xf32>
    %cst_22 = arith.constant dense<0.000000e+00> : vector<24xf32>
    %73 = vector.multi_reduction <add>, %72, %cst_22 [1] : vector<24x128xf32> to vector<24xf32>
    %74 = vector.shape_cast %73 : vector<24xf32> to vector<24x1xf32>
    %75 = arith.subf %66, %74 : vector<24x1xf32>
    %cst_23 = arith.constant 0.000000e+00 : f32
    %76 = vector.broadcast %cst_23 : f32 to vector<24x1xf32>
    %77 = arith.select %12, %75, %76 : vector<24x1xi1>, vector<24x1xf32>
    %78 = vector.shape_cast %77 : vector<24x1xf32> to vector<1x24x1xf32>
    %cst_24 = arith.constant dense<0.000000e+00> : vector<1xf32>
    %79 = vector.multi_reduction <add>, %78, %cst_24 [1, 2] : vector<1x24x1xf32> to vector<1xf32>
    %80 = vector.shape_cast %79 : vector<1xf32> to vector<1x1x1xf32>
    %81 = vector.extract %80[0, 0, 0] : f32 from vector<1x1x1xf32>
    %82 = tpu.iota {dimensions = array<i32: 2>} : vector<1x1x128xi32>
    %c0_i32_25 = arith.constant 0 : i32
    %83 = vector.broadcast %c0_i32_25 : i32 to vector<1x1x128xi32>
    %84 = arith.cmpi eq, %82, %83 : vector<1x1x128xi32>
    %c1_i32 = arith.constant 1 : i32
    %85 = vector.broadcast %c1_i32 : i32 to vector<1x1x128xi32>
    %86 = arith.cmpi eq, %82, %85 : vector<1x1x128xi32>
    %cst_26 = arith.constant 0.000000e+00 : f32
    %87 = vector.broadcast %81 : f32 to vector<1x1x128xf32>
    %88 = vector.broadcast %cst_26 : f32 to vector<1x1x128xf32>
    %89 = arith.select %86, %87, %88 : vector<1x1x128xi1>, vector<1x1x128xf32>
    %90 = vector.broadcast %49 : f32 to vector<1x1x128xf32>
    %91 = arith.select %84, %90, %89 : vector<1x1x128xi1>, vector<1x1x128xf32>
    %c0_27 = arith.constant 0 : index
    %c0_28 = arith.constant 0 : index
    %c0_29 = arith.constant 0 : index
    %92 = vector.load %arg5[%c0_27, %c0_28, %c0_29] : memref<1x1x128xf32, #tpu.memory_space<vmem>>, vector<1x1x128xf32>
    tpu.vector_store %arg5[%c0_27, %c0_28, %c0_29], %91 {strides = array<i32>} : memref<1x1x128xf32, #tpu.memory_space<vmem>>, vector<1x1x128xf32>,
    return
  }
  func.func @transform_0(%arg0: i32) -> (i32, i32) {
    %c0_i32 = arith.constant 0 : i32
    %c0_i32_0 = arith.constant 0 : i32
    return %arg0, %c0_i32 : i32, i32
  }
  func.func @transform_1(%arg0: i32) -> (i32, i32) {
    %c0_i32 = arith.constant 0 : i32
    %c0_i32_0 = arith.constant 0 : i32
    %c0_i32_1 = arith.constant 0 : i32
    return %c0_i32, %c0_i32_0 : i32, i32
  }
  func.func @transform_2(%arg0: i32) -> (i32, i32) {
    %c0_i32 = arith.constant 0 : i32
    %c0_i32_0 = arith.constant 0 : i32
    %c0_i32_1 = arith.constant 0 : i32
    return %c0_i32, %c0_i32_0 : i32, i32
  }
  func.func @transform_3(%arg0: i32) -> (i32, i32) {
    %c0_i32 = arith.constant 0 : i32
    %c0_i32_0 = arith.constant 0 : i32
    return %arg0, %c0_i32 : i32, i32
  }
  func.func @transform_4(%arg0: i32) -> (i32, i32, i32) {
    %c0_i32 = arith.constant 0 : i32
    %c0_i32_0 = arith.constant 0 : i32
    %c0_i32_1 = arith.constant 0 : i32
    return %arg0, %c0_i32, %c0_i32_0 : i32, i32, i32
  }
}

module attributes {stable_mosaic.version = 11 : i64} {
  func.func @kernel(%arg0: i32, %arg1: memref<24x32xf32, #tpu.memory_space<vmem>>, %arg2: memref<32x128xf32, #tpu.memory_space<vmem>>, %arg3: memref<1x128xf32, #tpu.memory_space<vmem>>, %arg4: memref<24x2xi32, #tpu.memory_space<vmem>>, %arg5: memref<1x1x128xf32, #tpu.memory_space<vmem>>) attributes {dimension_semantics = [#tpu.dimension_semantics<parallel>], iteration_bounds = array<i64: 3>, scalar_prefetch = 0 : i64, scratch_operands = 0 : i64, tpu.core_type = #tpu.core_type<tc>, window_params = [{transform_indices = @transform_0, window_bounds = array<i64: 24, 32>}, {pipeline_mode = #tpu.pipeline_mode<synchronous>, transform_indices = @transform_1, window_bounds = array<i64: 32, 128>}, {pipeline_mode = #tpu.pipeline_mode<synchronous>, transform_indices = @transform_2, window_bounds = array<i64: 1, 128>}, {transform_indices = @transform_3, window_bounds = array<i64: 24, 2>}, {transform_indices = @transform_4, window_bounds = array<i64: 1, 1, 128>}]} {
    %c0 = arith.constant 0 : index
    %c0_0 = arith.constant 0 : index
    %0 = vector.load %arg1[%c0, %c0_0] : memref<24x32xf32, #tpu.memory_space<vmem>>, vector<24x32xf32>
    %c0_1 = arith.constant 0 : index
    %c0_2 = arith.constant 0 : index
    %1 = vector.load %arg2[%c0_1, %c0_2] : memref<32x128xf32, #tpu.memory_space<vmem>>, vector<32x128xf32>
    %cst = arith.constant dense<0.000000e+00> : vector<24x128xf32>
    %2 = tpu.matmul %0, %1, %cst {dimension_numbers = #tpu.dot_dimension_numbers<[1], [0], [0], [1], [0, 0, 1, 1], [], []>} : vector<24x32xf32>, vector<32x128xf32>, vector<24x128xf32> -> vector<24x128xf32>
    %c0_3 = arith.constant 0 : index
    %c0_4 = arith.constant 0 : index
    %3 = vector.load %arg3[%c0_3, %c0_4] : memref<1x128xf32, #tpu.memory_space<vmem>>, vector<1x128xf32>
    %4 = vector.broadcast %3 : vector<1x128xf32> to vector<24x128xf32>
    %5 = arith.addf %2, %4 : vector<24x128xf32>
    %6 = tpu.iota {dimensions = array<i32: 1>} : vector<24x128xi32>
    %7 = tpu.iota {dimensions = array<i32: 0>} : vector<24x1xi32>
    %c24_i32 = arith.constant 24 : i32
    %8 = arith.muli %arg0, %c24_i32 : i32
    %9 = vector.broadcast %8 : i32 to vector<24x1xi32>
    %10 = arith.addi %9, %7 : vector<24x1xi32>
    %c50_i32 = arith.constant 50 : i32
    %11 = vector.broadcast %c50_i32 : i32 to vector<24x1xi32>
    %12 = arith.cmpi slt, %10, %11 : vector<24x1xi32>
    %cst_5 = arith.constant 0.000000e+00 : f32
    %13 = vector.shape_cast %12 : vector<24x1xi1> to vector<24x1xi1>
    %14 = vector.broadcast %13 : vector<24x1xi1> to vector<24x128xi1>
    %15 = vector.broadcast %cst_5 : f32 to vector<24x128xf32>
    %16 = arith.select %14, %5, %15 : vector<24x128xi1>, vector<24x128xf32>
    %c0_6 = arith.constant 0 : index
    %c0_7 = arith.constant 0 : index
    %17 = vector.load %arg4[%c0_6, %c0_7] : memref<24x2xi32, #tpu.memory_space<vmem>>, vector<24x2xi32>
    %18 = vector.extract_strided_slice %17 {offsets = [0, 0], sizes = [24, 1], strides = [1, 1]} : vector<24x2xi32> to vector<24x1xi32>
    %c0_i32 = arith.constant 0 : i32
    %19 = vector.broadcast %c0_i32 : i32 to vector<24x128xi32>
    %20 = arith.cmpi sge, %6, %19 : vector<24x128xi32>
    %c2_i32 = arith.constant 2 : i32
    %21 = vector.broadcast %c2_i32 : i32 to vector<24x128xi32>
    %22 = arith.cmpi slt, %6, %21 : vector<24x128xi32>
    %23 = arith.andi %20, %22 : vector<24x128xi1>
    %cst_8 = arith.constant -1.000000e+30 : f32
    %24 = vector.broadcast %cst_8 : f32 to vector<24x128xf32>
    %25 = arith.select %23, %16, %24 : vector<24x128xi1>, vector<24x128xf32>
    %cst_9 = arith.constant dense<0xFF800000> : vector<24xf32>
    %26 = vector.multi_reduction <maximumf>, %25, %cst_9 [1] : vector<24x128xf32> to vector<24xf32>
    %27 = vector.shape_cast %26 : vector<24xf32> to vector<24x1xf32>
    %28 = vector.broadcast %27 : vector<24x1xf32> to vector<24x128xf32>
    %29 = arith.subf %25, %28 : vector<24x128xf32>
    %30 = math.exp %29 : vector<24x128xf32>
    %cst_10 = arith.constant dense<0.000000e+00> : vector<24xf32>
    %31 = vector.multi_reduction <add>, %30, %cst_10 [1] : vector<24x128xf32> to vector<24xf32>
    %32 = vector.shape_cast %31 : vector<24xf32> to vector<24x1xf32>
    %33 = math.log %32 : vector<24x1xf32>
    %34 = arith.addf %33, %27 : vector<24x1xf32>
    %c0_i32_11 = arith.constant 0 : i32
    %35 = vector.broadcast %c0_i32_11 : i32 to vector<24x1xi32>
    %36 = arith.addi %18, %35 : vector<24x1xi32>
    %37 = vector.broadcast %36 : vector<24x1xi32> to vector<24x128xi32>
    %38 = arith.cmpi eq, %6, %37 : vector<24x128xi32>
    %cst_12 = arith.constant 0.000000e+00 : f32
    %39 = vector.broadcast %cst_12 : f32 to vector<24x128xf32>
    %40 = arith.select %38, %16, %39 : vector<24x128xi1>, vector<24x128xf32>
    %cst_13 = arith.constant dense<0.000000e+00> : vector<24xf32>
    %41 = vector.multi_reduction <add>, %40, %cst_13 [1] : vector<24x128xf32> to vector<24xf32>
    %42 = vector.shape_cast %41 : vector<24xf32> to vector<24x1xf32>
    %43 = arith.subf %34, %42 : vector<24x1xf32>
    %cst_14 = arith.constant 0.000000e+00 : f32
    %44 = vector.broadcast %cst_14 : f32 to vector<24x1xf32>
    %45 = arith.select %12, %43, %44 : vector<24x1xi1>, vector<24x1xf32>
    %46 = vector.shape_cast %45 : vector<24x1xf32> to vector<1x24x1xf32>
    %cst_15 = arith.constant dense<0.000000e+00> : vector<1xf32>
    %47 = vector.multi_reduction <add>, %46, %cst_15 [1, 2] : vector<1x24x1xf32> to vector<1xf32>
    %48 = vector.shape_cast %47 : vector<1xf32> to vector<1x1x1xf32>
    %49 = vector.extract %48[0, 0, 0] : f32 from vector<1x1x1xf32>
    %50 = vector.extract_strided_slice %17 {offsets = [0, 1], sizes = [24, 1], strides = [1, 1]} : vector<24x2xi32> to vector<24x1xi32>
    %c2_i32_16 = arith.constant 2 : i32
    %51 = vector.broadcast %c2_i32_16 : i32 to vector<24x128xi32>
    %52 = arith.cmpi sge, %6, %51 : vector<24x128xi32>
    %c6_i32 = arith.constant 6 : i32
    %53 = vector.broadcast %c6_i32 : i32 to vector<24x128xi32>
    %54 = arith.cmpi slt, %6, %53 : vector<24x128xi32>
    %55 = arith.andi %52, %54 : vector<24x128xi1>
    %cst_17 = arith.constant -1.000000e+30 : f32
    %56 = vector.broadcast %cst_17 : f32 to vector<24x128xf32>
    %57 = arith.select %55, %16, %56 : vector<24x128xi1>, vector<24x128xf32>
    %cst_18 = arith.constant dense<0xFF800000> : vector<24xf32>
    %58 = vector.multi_reduction <maximumf>, %57, %cst_18 [1] : vector<24x128xf32> to vector<24xf32>
    %59 = vector.shape_cast %58 : vector<24xf32> to vector<24x1xf32>
    %60 = vector.broadcast %59 : vector<24x1xf32> to vector<24x128xf32>
    %61 = arith.subf %57, %60 : vector<24x128xf32>
    %62 = math.exp %61 : vector<24x128xf32>
    %cst_19 = arith.constant dense<0.000000e+00> : vector<24xf32>
    %63 = vector.multi_reduction <add>, %62, %cst_19 [1] : vector<24x128xf32> to vector<24xf32>
    %64 = vector.shape_cast %63 : vector<24xf32> to vector<24x1xf32>
    %65 = math.log %64 : vector<24x1xf32>
    %66 = arith.addf %65, %59 : vector<24x1xf32>
    %c2_i32_20 = arith.constant 2 : i32
    %67 = vector.broadcast %c2_i32_20 : i32 to vector<24x1xi32>
    %68 = arith.addi %50, %67 : vector<24x1xi32>
    %69 = vector.broadcast %68 : vector<24x1xi32> to vector<24x128xi32>
    %70 = arith.cmpi eq, %6, %69 : vector<24x128xi32>
    %cst_21 = arith.constant 0.000000e+00 : f32
    %71 = vector.broadcast %cst_21 : f32 to vector<24x128xf32>
    %72 = arith.select %70, %16, %71 : vector<24x128xi1>, vector<24x128xf32>
    %cst_22 = arith.constant dense<0.000000e+00> : vector<24xf32>
    %73 = vector.multi_reduction <add>, %72, %cst_22 [1] : vector<24x128xf32> to vector<24xf32>
    %74 = vector.shape_cast %73 : vector<24xf32> to vector<24x1xf32>
    %75 = arith.subf %66, %74 : vector<24x1xf32>
    %cst_23 = arith.constant 0.000000e+00 : f32
    %76 = vector.broadcast %cst_23 : f32 to vector<24x1xf32>
    %77 = arith.select %12, %75, %76 : vector<24x1xi1>, vector<24x1xf32>
    %78 = vector.shape_cast %77 : vector<24x1xf32> to vector<1x24x1xf32>
    %cst_24 = arith.constant dense<0.000000e+00> : vector<1xf32>
    %79 = vector.multi_reduction <add>, %78, %cst_24 [1, 2] : vector<1x24x1xf32> to vector<1xf32>
    %80 = vector.shape_cast %79 : vector<1xf32> to vector<1x1x1xf32>
    %81 = vector.extract %80[0, 0, 0] : f32 from vector<1x1x1xf32>
    %82 = tpu.iota {dimensions = array<i32: 2>} : vector<1x1x128xi32>
    %c0_i32_25 = arith.constant 0 : i32
    %83 = vector.broadcast %c0_i32_25 : i32 to vector<1x1x128xi32>
    %84 = arith.cmpi eq, %82, %83 : vector<1x1x128xi32>
    %c1_i32 = arith.constant 1 : i32
    %85 = vector.broadcast %c1_i32 : i32 to vector<1x1x128xi32>
    %86 = arith.cmpi eq, %82, %85 : vector<1x1x128xi32>
    %cst_26 = arith.constant 0.000000e+00 : f32
    %87 = vector.broadcast %81 : f32 to vector<1x1x128xf32>
    %88 = vector.broadcast %cst_26 : f32 to vector<1x1x128xf32>
    %89 = arith.select %86, %87, %88 : vector<1x1x128xi1>, vector<1x1x128xf32>
    %90 = vector.broadcast %49 : f32 to vector<1x1x128xf32>
    %91 = arith.select %84, %90, %89 : vector<1x1x128xi1>, vector<1x1x128xf32>
    %c0_27 = arith.constant 0 : index
    %c0_28 = arith.constant 0 : index
    %c0_29 = arith.constant 0 : index
    %92 = vector.load %arg5[%c0_27, %c0_28, %c0_29] : memref<1x1x128xf32, #tpu.memory_space<vmem>>, vector<1x1x128xf32>
    tpu.vector_store %arg5[%c0_27, %c0_28, %c0_29], %91 {strides = array<i32>} : memref<1x1x128xf32, #tpu.memory_space<vmem>>, vector<1x1x128xf32>,
    return
  }
  func.func @transform_0(%arg0: i32) -> (i32, i32) {
    %c0_i32 = arith.constant 0 : i32
    %c0_i32_0 = arith.constant 0 : i32
    return %arg0, %c0_i32 : i32, i32
  }
  func.func @transform_1(%arg0: i32) -> (i32, i32) {
    %c0_i32 = arith.constant 0 : i32
    %c0_i32_0 = arith.constant 0 : i32
    %c0_i32_1 = arith.constant 0 : i32
    return %c0_i32, %c0_i32_0 : i32, i32
  }
  func.func @transform_2(%arg0: i32) -> (i32, i32) {
    %c0_i32 = arith.constant 0 : i32
    %c0_i32_0 = arith.constant 0 : i32
    %c0_i32_1 = arith.constant 0 : i32
    return %c0_i32, %c0_i32_0 : i32, i32
  }
  func.func @transform_3(%arg0: i32) -> (i32, i32) {
    %c0_i32 = arith.constant 0 : i32
    %c0_i32_0 = arith.constant 0 : i32
    return %arg0, %c0_i32 : i32, i32
  }
  func.func @transform_4(%arg0: i32) -> (i32, i32, i32) {
    %c0_i32 = arith.constant 0 : i32
    %c0_i32_0 = arith.constant 0 : i32
    %c0_i32_1 = arith.constant 0 : i32
    return %arg0, %c0_i32, %c0_i32_0 : i32, i32, i32
  }
}

</mosaic_0001>

<bundles_post_ra>
// kernel: tpu_custom_call.1
= control target key start
LH: loop header
LB: loop body
LE: loop exit
PB: predicated region body
PF: predicated region fallthrough
CT: control target
= control target key end

     0   :  { %9 = vsyncpa [#allocation3], 0  ;;  %s1086_s0 = inlined_call_operand.vmem [shape: f32[50,32], index: 0, kind: input, shape index: {}]   ;;  %s1087_s1 = inlined_call_operand.vmem [shape: f32[32,128], index: 1, kind: input, shape index: {}]   ;;  %s1088_s2 = inlined_call_operand.vmem [shape: f32[1,128], index: 2, kind: input, shape index: {}]   ;;  %s1089_s3 = inlined_call_operand.vmem [shape: s32[50,2], index: 3, kind: input, shape index: {}]   ;;  %s1090_s4 = inlined_call_operand.hbm [shape: f32[3,1,128], index: 4, kind: output, shape index: {}]  }
   0x1   :  { %11 = vsyncpa [#allocation3 + $0x1], 0  ;;  %s854_s15 = smov 0   ;;  %s856_s16 = smov 0  }
   0x2   :  { %s858_s17 = smov 0   ;;  %s860_s18 = smov 0  }
   0x3 LB: > { %s875_s19 = sadd.s32 4294967295, %s821_s18   ;;  %s634_s20 = sadd.s32 4294967294, %s821_s18   ;;  %s821_s18 = sphi %s860_s18, %s1098_s18   ;;  %s817_s17 = sphi %s858_s17, %s1097_s17   ;;  %s813_s16 = sphi %s856_s16, %s1096_s16   ;;  %s809_s15 = sphi %s854_s15, %s1095_s15  }
   0x4   : > { %s879_s21 = sadd.s32 1, %s821_s18   ;;  %s118_s22 = sadd.s32 1, %s817_s17 }
   0x5   : > { %s115_s23 = ssub.s32 %s821_s18, %s879_s21  ;;  %p128_p0 = scmp.ne.s32.totalorder %s817_s17, %s813_s16 }
   0x6   : > { %p116_p1 = scmp.eq.s32.totalorder %s115_s23, 0  ;;  %p129_p2 = scmp.eq.s32.totalorder %s875_s19, 2 }
   0x7   : > { %p134_p3 = scmp.ne.s32.totalorder %s813_s16, %s809_s15  ;;  %p135_p4 = scmp.eq.s32.totalorder %s634_s20, 2 }
   0x8   : > { %s890_s24 = scalar_select %p116_p1, %s817_s17, %s118_s22  }
   0x9   : > { %p892_p5 = por %p129_p2, %p128_p0  ;;  %p896_p6 = por %p135_p4, %p134_p3 }
   0xa   : > { %p637_p7 = scmp.ge.s32.totalorder %s821_s18, 1  ;;  %p193_p8 = scmp.lt.s32.totalorder %s821_s18, 4 }
   0xc   : > { %p194_p9 = pnand %p637_p7, %p193_p8 }
   0xd   : > { %v262_v0 = vld [vmem:[%s1087_s1] sm:$0xff] (!%p194_p9)  ;;  %v263_v1 = vld [vmem:[%s1087_s1 + $0x8] sm:$0xff] (!%p194_p9)  ;;  %v264_v2 = vld [vmem:[%s1087_s1 + $0x10] sm:$0xff] (!%p194_p9)  ;;  %v823_v3 = vmov (!%p194_p9), 0.0|0.0   ;;  %s231_s9 = smul.u32 (!%p194_p9), 3, %s875_s19  ;;  %vm824_vm0 = vmmov (!%p194_p9), 0   ;;  %v363_v12 = vlaneseq (!%p194_p9) }
   0xe   : > { %197 = sbr.rel (%p194_p9) target bundleno = 853 (0x355), region = 36  ;;  %671 = vmatprep.subr.bf16.mxu0 (!%p194_p9), %v823_v3  ;;  %v672_v4 = vpack.c.bf16 (!%p194_p9), %v263_v1, %v262_v0  ;;  %677 = vmatprep.subr.bf16.mxu1 (!%p194_p9), %v823_v3  ;;  %v265_v5 = vld [vmem:[%s1087_s1 + $0x18] sm:$0xff] (!%p194_p9)  ;;  %v825_v6 = vmov (!%p194_p9), 0.0   ;;  %vm273_vm1 = vcmask (!%p194_p9), 261120   ;;  %v826_v11 = vmov (!%p194_p9), 0   ;;  %s229_s29 = sand.u32 (!%p194_p9), 1, %s813_s16  }
   0xf   : > { %662 = vmatprep.mubr.msk.f32.mxu0 (!%p194_p9), %vm824_vm0, %v825_v6  ;;  %665 = vmatprep.mubr.msk.f32.mxu1 (!%p194_p9), %vm824_vm0, %v825_v6  ;;  %v675_v7 = vpack.c.bf16 (!%p194_p9), %v265_v5, %v264_v2  ;;  %p236_p10 = scmp.lt.s32.totalorder (!%p194_p9), %s231_s9, 6  ;;  %s369_s14 = smul.u32 (!%p194_p9), 24, %s875_s19  ;;  %v366_v13 = vshrl.u32 (!%p194_p9), %v363_v12, 7  ;;  %v927_v16 = vand.u32 (!%p194_p9), 127, %v363_v12  ;;  %v640_v20 = vld [vmem:[%s1088_s2] ss:$0 sm:$0xff] (!%p194_p9) }
  0x10   : > { %673 = vmatpush3.bf16.msra.mxu0 (!%p194_p9), %v672_v4  ;;  %679 = vmatpush3.bf16.msra.mxu1 (!%p194_p9), %v672_v4  ;;  %v827_v43 = vmov (!%p194_p9), 1   ;;  %vm452_vm15 = vcmask (!%p194_p9), 7168   ;;  %s644_s30 = sshll.u32 (!%p194_p9), %s875_s19, 4  ;;  %s230_s6 = scalar_lea.vmem (!%p194_p9), [#allocation2], %s229_s29 }
  0x11   : > { %674 = vmatprep.subr.bf16.mxu0 (!%p194_p9), %v823_v3  ;;  %678 = vmatprep.subr.bf16.mxu1 (!%p194_p9), %v823_v3  ;;  %v367_v14 = vadd.s32 (!%p194_p9), 8, %v366_v13  ;;  %v370_v15 = vstv (!%p194_p9), %s369_s14  ;;  %v368_v19 = vadd.s32 (!%p194_p9), 16, %v366_v13  ;;  %vm467_vm2 = vcmp.ge.s32.totalorder (!%p194_p9), %v927_v16, 2  ;;  %s567_s7 = sshll.u32 (!%p194_p9), %s230_s6, 4  ;;  %s1044_s11 = scalar_lea.hbm (!%p194_p9), %s1090_s4, %s644_s30  ;;  %s1046_s7 = int_to_ptr.vmem [resolvable:$true] %s567_s7 }
  0x12   : > { %730 = vset.pattern.permute.xlu1 (!%p194_p9), %v826_v11  ;;  %729 = vset.pattern.permute.xlu0 (!%p194_p9), %v826_v11  ;;  %v929_v17 = vadd.s32 (!%p194_p9), %v370_v15, %v366_v13  ;;  %vm468_vm3 = vcmp.lt.s32.totalorder (!%p194_p9), %v927_v16, 6  ;;  %vm390_vm7 = vcmp.lt.s32.totalorder (!%p194_p9), %v927_v16, 2  ;;  %s555_s19 = scalar_lea.sflag (!%p194_p9), [#allocation3], %s229_s29  ;;  %s759_s12 = scalar_lea.vmem (!%p194_p9), %s1046_s7, 16 }
  0x13   : > { %v931_v18 = vadd.s32 (!%p194_p9), %v370_v15, %v367_v14  ;;  %v940_v23 = vadd.s32 (!%p194_p9), %v370_v15, %v368_v19  ;;  %vm942_vm6 = vmand (!%p194_p9), %vm467_vm2, %vm468_vm3  ;;  %p760_p11 = scmp.ne.s32.totalorder (!%p194_p9), %s1046_s7, %s759_s12 }
  0x14   : > { %676 = vmatpush3.bf16.msra.mxu0 (!%p194_p9), %v675_v7  ;;  %680 = vmatpush3.bf16.msra.mxu1 (!%p194_p9), %v675_v7  ;;  %vm374_vm4 = vcmp.lt.s32.totalorder (!%p194_p9), %v929_v17, 50 }
  0x15   : > { %s1100_s9 = smov (!%p236_p10, %s231_s9), 6  ;;  %vm375_vm5 = vcmp.lt.s32.totalorder %v931_v18, 50  ;;  %vm376_vm8 = vcmp.lt.s32.totalorder %v940_v23, 50  ;;  %p761_p12 = pnand %p760_p11, %p892_p5 }
  0x16   : > { %s638_s10 = sshll.u32 %s1100_s9, 3 }
  0x17   : > { %s239_s13 = scalar_lea.vmem %s1086_s0, %s638_s10  ;;  %s253_s28 = scalar_lea.vmem %s1089_s3, %s638_s10 }
  0x18   : > { %v259_v8 = vld [vmem:[%s239_s13] sm:$0xff]  ;;  %v260_v9 = vld [vmem:[%s239_s13 + $0x8] sm:$0xff]  ;;  %v261_v10 = vld [vmem:[%s239_s13 + $0x10] sm:$0xff]  ;;  %p762_p13 = pneg %p761_p12  ;;  %s828_s13 = smov [#allocation2]  }
  0x19   : > { %663 = vmatmul.mubr.msk.f32.vlgmr.msra.gmra.mrb[0].mxu0 %vm273_vm1, %v259_v8  ;;  %666 = vmatmul.mubr.msk.f32.vlgmr.msra.gmra.mrb[0].mxu1 %vm273_vm1, %v260_v9  ;;  %v387_v40 = vld [vmem:[%s253_s28 + $0x8] sm:$0xff]  ;;  %v386_v41 = vld [vmem:[%s253_s28] sm:$0xff]  ;;  %v388_v45 = vld [vmem:[%s253_s28 + $0x10] sm:$0xff]  ;;  %s763_s14 = sshll.u32 %s828_s13, 4  ;;  %s764_s14 = int_to_ptr.vmem [resolvable:$false] %s763_s14 }
  0x1a   : > { %668 = vmatprep.mubr.msk.f32.mxu1 %vm824_vm0, %v825_v6  ;;  %v503_v42 = vadd.s32 2, %v386_v41  ;;  %v504_v44 = vadd.s32 2, %v387_v40  ;;  %v505_v47 = vadd.s32 2, %v388_v45  ;;  %vm548_vm0 = vcmp.eq.s32.totalorder %v927_v16, 1  ;;  %s765_s20 = scalar_lea.vmem %s764_s14, 32  ;;  %p766_p0 = scmp.lt.s32.totalorder %s1046_s7, %s764_s14 }
  0x1b   : > { %p767_p1 = scmp.lt.s32.totalorder %s765_s20, %s759_s12 }
  0x1d   : > { %669 = vmatmul.mubr.msk.f32.gmra.mrb[2].mxu1 %vm273_vm1, %v261_v10  ;;  %vm547_vm1 = vcmp.eq.s32.totalorder %v927_v16, 0  ;;  %p768_p2 = por %p767_p1, %p766_p0 }
  0x1f   : > { %p769_p3 = pnand %p768_p2, %p762_p13 }
  0xec   : > { %v349_v21 = vpop.f32.mrb[0].mxu0  ;;  %v354_v22 = vpop.f32.mrb[0].mxu1 }
  0xed   : > { %v350_v24 = vadd.f32 %v640_v20, %v349_v21  ;;  %v664_v25 = vpop.f32.mrb[1].mxu0  ;;  %v355_v26 = vadd.f32 %v640_v20, %v354_v22  ;;  %v667_v27 = vpop.f32.mrb[1].mxu1 }
  0xef   : > { %v949_v29 = vsel %vm374_vm4, %v350_v24, 0.0  ;;  %v953_v30 = vsel %vm375_vm5, %v355_v26, 0.0 }
  0xf0   : > { %v470_v31 = vsel %vm942_vm6, %v949_v29, -1e+30  ;;  %v392_v32 = vsel %vm390_vm7, %v949_v29, -1e+30  ;;  %v359_v33 = vpop.f32.mrb[2].mxu1 }
  0xf1   : > { %473 = vmax.xlane.f32.xlu1 %v470_v31  ;;  %395 = vmax.xlane.f32.xlu0 %v392_v32  ;;  %v360_v34 = vadd.f32 %v640_v20, %v359_v33  ;;  %v670_v35 = vpop.f32.mrb[3].mxu1  ;;  %v471_v36 = vsel %vm942_vm6, %v953_v30, -1e+30  ;;  %v393_v37 = vsel %vm390_vm7, %v953_v30, -1e+30 }
  0xf3   : > { %v970_v38 = vsel %vm376_vm8, %v360_v34, 0.0 }
  0xf4   : > { %v394_v39 = vsel %vm390_vm7, %v970_v38, -1e+30  ;;  %v472_v46 = vsel %vm942_vm6, %v970_v38, -1e+30 }
  0xf5   : > { %475 = vmax.xlane.f32.xlu1 %v471_v36  ;;  %397 = vmax.xlane.f32.xlu0 %v393_v37 }
  0xf9   : > { %399 = vmax.xlane.f32.xlu0 %v394_v39 }
 0x106   : > { %429 = vperm.xlu1 %730, %v387_v40  }
 0x10a   : > { %731 = vset.pattern.permute.xlu1 %v827_v43 }
 0x10b   : > { %507 = vperm.xlu1 %731, %v503_v42  }
 0x10f   : > { %510 = vperm.xlu1 %731, %v504_v44   ;;  %426 = vperm.xlu0 %729, %v386_v41  }
 0x113   : > { %732 = vset.pattern.permute.xlu1 %v826_v11  ;;  %734 = vset.pattern.permute.xlu0 %v827_v43 }
 0x114   : > { %432 = vperm.xlu1 %732, %v388_v45  }
 0x118   : > { %733 = vset.pattern.permute.xlu1 %v827_v43 }
 0x138   : > { %477 = vmax.xlane.f32.xlu1 %v472_v46 }
 0x149   : > { %513 = vperm.xlu1 %733, %v505_v47  }
 0x17e   : > { %v983_v48 = vpop.xlane.xlu1 %473  ;;  %v985_v49 = vpop.xlane.xlu0 %395 }
 0x17f   : > { %v479_v50 = vsub.f32 %v470_v31, %v983_v48  ;;  %v401_v51 = vsub.f32 %v392_v32, %v985_v49 }
 0x181   : > { %v404_v52 = vmul.f32 1.442695, %v401_v51  ;;  %v482_v55 = vmul.f32 1.442695, %v479_v50 }
 0x182   : > { %v989_v53 = vpop.xlane.xlu1 %475  ;;  %v991_v54 = vpop.xlane.xlu0 %397 }
 0x183   : > { %v402_v56 = vsub.f32 %v393_v37, %v991_v54  ;;  %735 = vpow2.f32 %v404_v52  ;;  %v480_v57 = vsub.f32 %v471_v36, %v989_v53 }
 0x184   : > { %737 = vpow2.f32 %v482_v55 }
 0x185   : > { %v406_v58 = vmul.f32 1.442695, %v402_v56  ;;  %v484_v61 = vmul.f32 1.442695, %v480_v57 }
 0x186   : > { %v995_v59 = vpop.xlane.xlu0 %399  ;;  %v430_v63 = vpop.permute.xlu1 %429 }
 0x187   : > { %v403_v60 = vsub.f32 %v394_v39, %v995_v59  ;;  %739 = vpow2.f32 %v406_v58  ;;  %vm435_vm12 = vcmp.eq.s32.totalorder %v927_v16, %v430_v63 }
 0x188   : > { %v438_v19 = vsel %vm435_vm12, %v953_v30, 0.0 }
 0x189   : > { %v408_v62 = vmul.f32 1.442695, %v403_v60 }
 0x18a   : > { %v508_v1 = vpop.permute.xlu1 %507 }
 0x18b   : > { %741 = vpow2.f32 %v408_v62  ;;  %vm515_vm10 = vcmp.eq.s32.totalorder %v927_v16, %v508_v1 }
 0x18c   : > { %743 = vpow2.f32 %v484_v61  ;;  %v518_v10 = vsel %vm515_vm10, %v949_v29, 0.0 }
 0x18d   : > { %v736_v0 = vpop.eup %735 }
 0x18e   : > { %410 = vadd.xlane.f32.xlu1 %v736_v0  ;;  %v738_v2 = vpop.eup %737  ;;  %v427_v4 = vpop.permute.xlu0 %426 }
 0x18f   : > { %v511_v7 = vpop.permute.xlu1 %510  ;;  %vm434_vm9 = vcmp.eq.s32.totalorder %v927_v16, %v427_v4 }
 0x190   : > { %v437_v8 = vsel %vm434_vm9, %v949_v29, 0.0  ;;  %vm516_vm13 = vcmp.eq.s32.totalorder %v927_v16, %v511_v7 }
 0x191   : > { %v740_v3 = vpop.eup %739  ;;  %v519_v21 = vsel %vm516_vm13, %v953_v30, 0.0 }
 0x192   : > { %488 = vadd.xlane.f32.xlu1 %v738_v2  ;;  %412 = vadd.xlane.f32.xlu0 %v740_v3 }
 0x193   : > { %v433_v9 = vpop.permute.xlu1 %432 }
 0x194   : > { %vm436_vm11 = vcmp.eq.s32.totalorder %v927_v16, %v433_v9 }
 0x195   : > { %v742_v5 = vpop.eup %741  ;;  %v439_v11 = vsel %vm436_vm11, %v970_v38, 0.0 }
 0x196   : > { %v744_v6 = vpop.eup %743  ;;  %414 = vadd.xlane.f32.xlu0 %v742_v5 }
 0x197   : > { %490 = vadd.xlane.f32.xlu1 %v744_v6 }
 0x19a   : > { %440 = vadd.xlane.f32.xlu0 %v437_v8 }
 0x19e   : > { %521 = vadd.xlane.f32.xlu0 %v518_v10 }
 0x1a2   : > { %444 = vadd.xlane.f32.xlu0 %v439_v11 }
 0x1c5   : > { %v1004_v12 = vpop.xlane.xlu1 %477 }
 0x1c6   : > { %v481_v13 = vsub.f32 %v472_v46, %v1004_v12 }
 0x1c8   : > { %v486_v14 = vmul.f32 1.442695, %v481_v13 }
 0x1c9   : > { %v514_v20 = vpop.permute.xlu1 %513 }
 0x1ca   : > { %745 = vpow2.f32 %v486_v14  ;;  %vm517_vm14 = vcmp.eq.s32.totalorder %v927_v16, %v514_v20 }
 0x1cb   : > { %v520_v22 = vsel %vm517_vm14, %v970_v38, 0.0 }
 0x1d4   : > { %v746_v15 = vpop.eup %745 }
 0x1d5   : > { %492 = vadd.xlane.f32.xlu1 %v746_v15 }
 0x1d9   : > { %442 = vadd.xlane.f32.xlu1 %v438_v19 }
 0x1dd   : > { %523 = vadd.xlane.f32.xlu1 %v519_v21 }
 0x1e1   : > { %525 = vadd.xlane.f32.xlu1 %v520_v22 }
 0x21b   : > { %v411_v25 = vpop.xlane.xlu1 %410 }
 0x21c   : > { %747 = vlog2.f32 %v411_v25 }
 0x21f   : > { %v413_v24 = vpop.xlane.xlu0 %412  ;;  %v489_v27 = vpop.xlane.xlu1 %488 }
 0x223   : > { %v415_v26 = vpop.xlane.xlu0 %414 }
 0x224   : > { %749 = vlog2.f32 %v415_v26  ;;  %v491_v28 = vpop.xlane.xlu1 %490 }
 0x225   : > { %751 = vlog2.f32 %v413_v24 }
 0x226   : > { %753 = vlog2.f32 %v489_v27  ;;  %v748_v29 = vpop.eup %747 }
 0x227   : > { %755 = vlog2.f32 %v491_v28  ;;  %v441_v31 = vpop.xlane.xlu0 %440  ;;  %v417_v30 = vmul.f32 0.6931472, %v748_v29 }
 0x229   : > { %v422_v36 = vadd.f32 %v417_v30, %v985_v49 }
 0x22b   : > { %v522_v35 = vpop.xlane.xlu0 %521  ;;  %v446_v42 = vsub.f32 %v422_v36, %v441_v31 }
 0x22d   : > { %v449_v51 = vsel %vm374_vm4, %v446_v42, 0.0 }
 0x22e   : > { %v750_v32 = vpop.eup %749  ;;  %v453_v58 = vsel %vm452_vm15, %v449_v51, 0.0 }
 0x22f   : > { %v421_v33 = vmul.f32 0.6931472, %v750_v32  ;;  %v752_v34 = vpop.eup %751  ;;  %v445_v44 = vpop.xlane.xlu0 %444 }
 0x230   : > { %v754_v37 = vpop.eup %753  ;;  %v419_v38 = vmul.f32 0.6931472, %v752_v34 }
 0x231   : > { %v424_v39 = vadd.f32 %v421_v33, %v995_v59  ;;  %v756_v40 = vpop.eup %755  ;;  %v495_v43 = vmul.f32 0.6931472, %v754_v37 }
 0x232   : > { %v497_v45 = vmul.f32 0.6931472, %v756_v40  ;;  %v423_v47 = vadd.f32 %v419_v38, %v991_v54 }
 0x233   : > { %v448_v46 = vsub.f32 %v424_v39, %v445_v44  ;;  %v500_v52 = vadd.f32 %v495_v43, %v983_v48 }
 0x234   : > { %v501_v57 = vadd.f32 %v497_v45, %v989_v53 }
 0x235   : > { %v451_v55 = vsel %vm376_vm8, %v448_v46, 0.0  ;;  %v527_v62 = vsub.f32 %v500_v52, %v522_v35 }
 0x236   : > { %v456_v63 = vsel %vm452_vm15, %v451_v55, 0.0 }
 0x237   : > { %v530_v53 = vsel %vm374_vm4, %v527_v62, 0.0 }
 0x238   : > { %v533_v7 = vsel %vm452_vm15, %v530_v53, 0.0 }
 0x262   : > { %v493_v41 = vpop.xlane.xlu1 %492 }
 0x263   : > { %757 = vlog2.f32 %v493_v41 }
 0x266   : > { %v443_v50 = vpop.xlane.xlu1 %442 }
 0x267   : > { %v447_v49 = vsub.f32 %v423_v47, %v443_v50 }
 0x269   : > { %v450_v56 = vsel %vm375_vm5, %v447_v49, 0.0 }
 0x26a   : > { %v454_v54 = vsel %vm452_vm15, %v450_v56, 0.0  ;;  %v524_v59 = vpop.xlane.xlu1 %523 }
 0x26b   : > { %v528_v60 = vsub.f32 %v501_v57, %v524_v59  ;;  %v455_v61 = vadd.f32 %v454_v54, %v453_v58 }
 0x26d   : > { %v758_v0 = vpop.eup %757  ;;  %v457_v48 = vadd.f32 %v456_v63, %v455_v61  ;;  %v531_v2 = vsel %vm375_vm5, %v528_v60, 0.0 }
 0x26e   : > { %v499_v1 = vmul.f32 0.6931472, %v758_v0  ;;  %v534_v4 = vsel %vm452_vm15, %v531_v2, 0.0  ;;  %v526_v5 = vpop.xlane.xlu1 %525 }
 0x26f   : > { %458 = vadd.xlane.f32.xlu0 %v457_v48  ;;  %v535_v9 = vadd.f32 %v534_v4, %v533_v7 }
 0x270   : > { %v502_v3 = vadd.f32 %v499_v1, %v1004_v12 }
 0x272   : > { %v529_v6 = vsub.f32 %v502_v3, %v526_v5 }
 0x274   : > { %v532_v8 = vsel %vm376_vm8, %v529_v6, 0.0 }
 0x275   : > { %v536_v10 = vsel %vm452_vm15, %v532_v8, 0.0 }
 0x276   : > { %v537_v18 = vadd.f32 %v536_v10, %v535_v9 }
 0x278   : > { %538 = vadd.xlane.f32.xlu1 %v537_v18 }
 0x2fc   : > { %v459_v11 = vpop.xlane.xlu0 %458 }
 0x2fd   : > { %v460_v17 = vrot.slane %v459_v11, 4 }
 0x2ff   : > { %v461_v13 = vadd.f32 %v460_v17, %v459_v11 }
 0x301   : > { %v462_v12 = vrot.slane %v461_v13, 2 }
 0x303   : > { %v463_v14 = vadd.f32 %v462_v12, %v461_v13 }
 0x305   : > { %v539_v15 = vpop.xlane.xlu1 %538  ;;  %v464_v19 = vrot.slane %v463_v14, 1 }
 0x306   : > { %v540_v20 = vrot.slane %v539_v15, 4 }
 0x307   : > { %v465_v21 = vadd.f32 %v464_v19, %v463_v14 }
 0x308   : > { %v541_v22 = vadd.f32 %v540_v20, %v539_v15 }
 0x309   : > { %681 = vpush %v465_v21 }
 0x30a   : > { %v542_v23 = vrot.slane %v541_v22, 2 }
 0x30c   : > { %v543_v24 = vadd.f32 %v542_v23, %v541_v22 }
 0x30e   : > { %v544_v25 = vrot.slane %v543_v24, 1 }
 0x310   : > { %v545_v26 = vadd.f32 %v544_v25, %v543_v24 }
 0x312   : > { %683 = vpush %v545_v26 }
 0x33a   : > { %s682_s5 = spop %681 }
 0x33b   : > { %v551_v28 = vstv %s682_s5 }
 0x343   : > { %s684_s8 = spop %683 }
 0x344   : > { %v549_v27 = vstv %s684_s8 }
 0x345   : > { %v550_v29 = vsel %vm548_vm0, %v549_v27, 0.0 }
 0x346   : > { %v552_v31 = vsel %vm547_vm1, %v551_v28, %v550_v29 }
 0x347   : > { %553 = vst [vmem:[%s230_s6] sm:$0x1] %v552_v31 }
 0x348   : > { %772 = shalt.err (!%p769_p3)
}
 0x349   : > { %s773_s22 = scalar_lea.hbm %s1044_s11, 16  ;;  %s777_s28 = scalar_lea.hbm %s1090_s4, 48 }
 0x34a   : > { %p774_p4 = scmp.ne.s32.totalorder %s1044_s11, %s773_s22  ;;  %p778_p9 = scmp.lt.u32.totalorder %s1044_s11, %s1090_s4 }
 0x34b   : > { %p779_p10 = scmp.lt.u32.totalorder %s777_s28, %s773_s22  ;;  %p781_p12 = scmp.lt.u32.totalorder %s773_s22, %s1044_s11 }
 0x34c   : > { %p775_p7 = pnand %p774_p4, %p892_p5 }
 0x34d   : > { %p780_p11 = por %p779_p10, %p778_p9 }
 0x34e   : > { %p776_p8 = pneg %p775_p7 }
 0x34f   : > { %p782_p13 = por %p781_p12, %p780_p11 }
 0x351   : > { %p783_p0 = pnand %p782_p13, %p776_p8 }
 0x353   : > { %786 = shalt.err (!%p783_p0)
}
 0x354   : > { %685 = dma.vmem_to_hbm [thread:$0]  (%p892_p5), %s1046_s7, 16, %s1044_s11, %s555_s19  }
 0x355 PF: > { %p691_p1 = scmp.ge.s32.totalorder %s821_s18, 2  ;;  %s579_s5 = sand.u32 1, %s809_s15  }
 0x356   : > { %s580_s6 = scalar_lea.sflag [#allocation3], %s579_s5 }
 0x357   : > { %p688_p2 = pnand %p691_p1, %p896_p6 }
 0x359   : > { %804 = dma.done.wait (!%p688_p2), %s580_s6, 16  }
 0x35a   : > { %806 = vsyncadd (!%p688_p2), %s580_s6, 4294967280  ;;  %p14_p3 = scmp.ge.s32.totalorder %s879_s21, 5   ;;  %s1095_s15 = smov %s813_s16 }
 0x35b   : > { %s1096_s16 = smov %s817_s17  ;;  %s1097_s17 = smov %s890_s24 }
 0x35c   : > { %s1098_s18 = smov %s879_s21  ;;  %16 = sbr.rel (!%p14_p3) target bundleno = 3 (0x3), region = 74 }
 0x363   :  { %584 = vsyncpa [#allocation3], 1 }
 0x364   :  { %586 = vsyncpa [#allocation3 + $0x1], 1 }

// kernel: tpu_custom_call.1
= control target key start
LH: loop header
LB: loop body
LE: loop exit
PB: predicated region body
PF: predicated region fallthrough
CT: control target
= control target key end

     0   :  { %9 = vsyncpa [#allocation3], 0  ;;  %s1086_s0 = inlined_call_operand.vmem [shape: f32[50,32], index: 0, kind: input, shape index: {}]   ;;  %s1087_s1 = inlined_call_operand.vmem [shape: f32[32,128], index: 1, kind: input, shape index: {}]   ;;  %s1088_s2 = inlined_call_operand.vmem [shape: f32[1,128], index: 2, kind: input, shape index: {}]   ;;  %s1089_s3 = inlined_call_operand.vmem [shape: s32[50,2], index: 3, kind: input, shape index: {}]   ;;  %s1090_s4 = inlined_call_operand.hbm [shape: f32[3,1,128], index: 4, kind: output, shape index: {}]  }
   0x1   :  { %11 = vsyncpa [#allocation3 + $0x1], 0  ;;  %s854_s15 = smov 0   ;;  %s856_s16 = smov 0  }
   0x2   :  { %s858_s17 = smov 0   ;;  %s860_s18 = smov 0  }
   0x3 LB: > { %s875_s19 = sadd.s32 4294967295, %s821_s18   ;;  %s634_s20 = sadd.s32 4294967294, %s821_s18   ;;  %s821_s18 = sphi %s860_s18, %s1098_s18   ;;  %s817_s17 = sphi %s858_s17, %s1097_s17   ;;  %s813_s16 = sphi %s856_s16, %s1096_s16   ;;  %s809_s15 = sphi %s854_s15, %s1095_s15  }
   0x4   : > { %s879_s21 = sadd.s32 1, %s821_s18   ;;  %s118_s22 = sadd.s32 1, %s817_s17 }
   0x5   : > { %s115_s23 = ssub.s32 %s821_s18, %s879_s21  ;;  %p128_p0 = scmp.ne.s32.totalorder %s817_s17, %s813_s16 }
   0x6   : > { %p116_p1 = scmp.eq.s32.totalorder %s115_s23, 0  ;;  %p129_p2 = scmp.eq.s32.totalorder %s875_s19, 2 }
   0x7   : > { %p134_p3 = scmp.ne.s32.totalorder %s813_s16, %s809_s15  ;;  %p135_p4 = scmp.eq.s32.totalorder %s634_s20, 2 }
   0x8   : > { %s890_s24 = scalar_select %p116_p1, %s817_s17, %s118_s22  }
   0x9   : > { %p892_p5 = por %p129_p2, %p128_p0  ;;  %p896_p6 = por %p135_p4, %p134_p3 }
   0xa   : > { %p637_p7 = scmp.ge.s32.totalorder %s821_s18, 1  ;;  %p193_p8 = scmp.lt.s32.totalorder %s821_s18, 4 }
   0xc   : > { %p194_p9 = pnand %p637_p7, %p193_p8 }
   0xd   : > { %v262_v0 = vld [vmem:[%s1087_s1] sm:$0xff] (!%p194_p9)  ;;  %v263_v1 = vld [vmem:[%s1087_s1 + $0x8] sm:$0xff] (!%p194_p9)  ;;  %v264_v2 = vld [vmem:[%s1087_s1 + $0x10] sm:$0xff] (!%p194_p9)  ;;  %v823_v3 = vmov (!%p194_p9), 0.0|0.0   ;;  %s231_s9 = smul.u32 (!%p194_p9), 3, %s875_s19  ;;  %vm824_vm0 = vmmov (!%p194_p9), 0   ;;  %v363_v12 = vlaneseq (!%p194_p9) }
   0xe   : > { %197 = sbr.rel (%p194_p9) target bundleno = 853 (0x355), region = 36  ;;  %671 = vmatprep.subr.bf16.mxu0 (!%p194_p9), %v823_v3  ;;  %v672_v4 = vpack.c.bf16 (!%p194_p9), %v263_v1, %v262_v0  ;;  %677 = vmatprep.subr.bf16.mxu1 (!%p194_p9), %v823_v3  ;;  %v265_v5 = vld [vmem:[%s1087_s1 + $0x18] sm:$0xff] (!%p194_p9)  ;;  %v825_v6 = vmov (!%p194_p9), 0.0   ;;  %vm273_vm1 = vcmask (!%p194_p9), 261120   ;;  %v826_v11 = vmov (!%p194_p9), 0   ;;  %s229_s29 = sand.u32 (!%p194_p9), 1, %s813_s16  }
   0xf   : > { %662 = vmatprep.mubr.msk.f32.mxu0 (!%p194_p9), %vm824_vm0, %v825_v6  ;;  %665 = vmatprep.mubr.msk.f32.mxu1 (!%p194_p9), %vm824_vm0, %v825_v6  ;;  %v675_v7 = vpack.c.bf16 (!%p194_p9), %v265_v5, %v264_v2  ;;  %p236_p10 = scmp.lt.s32.totalorder (!%p194_p9), %s231_s9, 6  ;;  %s369_s14 = smul.u32 (!%p194_p9), 24, %s875_s19  ;;  %v366_v13 = vshrl.u32 (!%p194_p9), %v363_v12, 7  ;;  %v927_v16 = vand.u32 (!%p194_p9), 127, %v363_v12  ;;  %v640_v20 = vld [vmem:[%s1088_s2] ss:$0 sm:$0xff] (!%p194_p9) }
  0x10   : > { %673 = vmatpush3.bf16.msra.mxu0 (!%p194_p9), %v672_v4  ;;  %679 = vmatpush3.bf16.msra.mxu1 (!%p194_p9), %v672_v4  ;;  %v827_v43 = vmov (!%p194_p9), 1   ;;  %vm452_vm15 = vcmask (!%p194_p9), 7168   ;;  %s644_s30 = sshll.u32 (!%p194_p9), %s875_s19, 4  ;;  %s230_s6 = scalar_lea.vmem (!%p194_p9), [#allocation2], %s229_s29 }
  0x11   : > { %674 = vmatprep.subr.bf16.mxu0 (!%p194_p9), %v823_v3  ;;  %678 = vmatprep.subr.bf16.mxu1 (!%p194_p9), %v823_v3  ;;  %v367_v14 = vadd.s32 (!%p194_p9), 8, %v366_v13  ;;  %v370_v15 = vstv (!%p194_p9), %s369_s14  ;;  %v368_v19 = vadd.s32 (!%p194_p9), 16, %v366_v13  ;;  %vm467_vm2 = vcmp.ge.s32.totalorder (!%p194_p9), %v927_v16, 2  ;;  %s567_s7 = sshll.u32 (!%p194_p9), %s230_s6, 4  ;;  %s1044_s11 = scalar_lea.hbm (!%p194_p9), %s1090_s4, %s644_s30  ;;  %s1046_s7 = int_to_ptr.vmem [resolvable:$true] %s567_s7 }
  0x12   : > { %730 = vset.pattern.permute.xlu1 (!%p194_p9), %v826_v11  ;;  %729 = vset.pattern.permute.xlu0 (!%p194_p9), %v826_v11  ;;  %v929_v17 = vadd.s32 (!%p194_p9), %v370_v15, %v366_v13  ;;  %vm468_vm3 = vcmp.lt.s32.totalorder (!%p194_p9), %v927_v16, 6  ;;  %vm390_vm7 = vcmp.lt.s32.totalorder (!%p194_p9), %v927_v16, 2  ;;  %s555_s19 = scalar_lea.sflag (!%p194_p9), [#allocation3], %s229_s29  ;;  %s759_s12 = scalar_lea.vmem (!%p194_p9), %s1046_s7, 16 }
  0x13   : > { %v931_v18 = vadd.s32 (!%p194_p9), %v370_v15, %v367_v14  ;;  %v940_v23 = vadd.s32 (!%p194_p9), %v370_v15, %v368_v19  ;;  %vm942_vm6 = vmand (!%p194_p9), %vm467_vm2, %vm468_vm3  ;;  %p760_p11 = scmp.ne.s32.totalorder (!%p194_p9), %s1046_s7, %s759_s12 }
  0x14   : > { %676 = vmatpush3.bf16.msra.mxu0 (!%p194_p9), %v675_v7  ;;  %680 = vmatpush3.bf16.msra.mxu1 (!%p194_p9), %v675_v7  ;;  %vm374_vm4 = vcmp.lt.s32.totalorder (!%p194_p9), %v929_v17, 50 }
  0x15   : > { %s1100_s9 = smov (!%p236_p10, %s231_s9), 6  ;;  %vm375_vm5 = vcmp.lt.s32.totalorder %v931_v18, 50  ;;  %vm376_vm8 = vcmp.lt.s32.totalorder %v940_v23, 50  ;;  %p761_p12 = pnand %p760_p11, %p892_p5 }
  0x16   : > { %s638_s10 = sshll.u32 %s1100_s9, 3 }
  0x17   : > { %s239_s13 = scalar_lea.vmem %s1086_s0, %s638_s10  ;;  %s253_s28 = scalar_lea.vmem %s1089_s3, %s638_s10 }
  0x18   : > { %v259_v8 = vld [vmem:[%s239_s13] sm:$0xff]  ;;  %v260_v9 = vld [vmem:[%s239_s13 + $0x8] sm:$0xff]  ;;  %v261_v10 = vld [vmem:[%s239_s13 + $0x10] sm:$0xff]  ;;  %p762_p13 = pneg %p761_p12  ;;  %s828_s13 = smov [#allocation2]  }
  0x19   : > { %663 = vmatmul.mubr.msk.f32.vlgmr.msra.gmra.mrb[0].mxu0 %vm273_vm1, %v259_v8  ;;  %666 = vmatmul.mubr.msk.f32.vlgmr.msra.gmra.mrb[0].mxu1 %vm273_vm1, %v260_v9  ;;  %v387_v40 = vld [vmem:[%s253_s28 + $0x8] sm:$0xff]  ;;  %v386_v41 = vld [vmem:[%s253_s28] sm:$0xff]  ;;  %v388_v45 = vld [vmem:[%s253_s28 + $0x10] sm:$0xff]  ;;  %s763_s14 = sshll.u32 %s828_s13, 4  ;;  %s764_s14 = int_to_ptr.vmem [resolvable:$false] %s763_s14 }
  0x1a   : > { %668 = vmatprep.mubr.msk.f32.mxu1 %vm824_vm0, %v825_v6  ;;  %v503_v42 = vadd.s32 2, %v386_v41  ;;  %v504_v44 = vadd.s32 2, %v387_v40  ;;  %v505_v47 = vadd.s32 2, %v388_v45  ;;  %vm548_vm0 = vcmp.eq.s32.totalorder %v927_v16, 1  ;;  %s765_s20 = scalar_lea.vmem %s764_s14, 32  ;;  %p766_p0 = scmp.lt.s32.totalorder %s1046_s7, %s764_s14 }
  0x1b   : > { %p767_p1 = scmp.lt.s32.totalorder %s765_s20, %s759_s12 }
  0x1d   : > { %669 = vmatmul.mubr.msk.f32.gmra.mrb[2].mxu1 %vm273_vm1, %v261_v10  ;;  %vm547_vm1 = vcmp.eq.s32.totalorder %v927_v16, 0  ;;  %p768_p2 = por %p767_p1, %p766_p0 }
  0x1f   : > { %p769_p3 = pnand %p768_p2, %p762_p13 }
  0xec   : > { %v349_v21 = vpop.f32.mrb[0].mxu0  ;;  %v354_v22 = vpop.f32.mrb[0].mxu1 }
  0xed   : > { %v350_v24 = vadd.f32 %v640_v20, %v349_v21  ;;  %v664_v25 = vpop.f32.mrb[1].mxu0  ;;  %v355_v26 = vadd.f32 %v640_v20, %v354_v22  ;;  %v667_v27 = vpop.f32.mrb[1].mxu1 }
  0xef   : > { %v949_v29 = vsel %vm374_vm4, %v350_v24, 0.0  ;;  %v953_v30 = vsel %vm375_vm5, %v355_v26, 0.0 }
  0xf0   : > { %v470_v31 = vsel %vm942_vm6, %v949_v29, -1e+30  ;;  %v392_v32 = vsel %vm390_vm7, %v949_v29, -1e+30  ;;  %v359_v33 = vpop.f32.mrb[2].mxu1 }
  0xf1   : > { %473 = vmax.xlane.f32.xlu1 %v470_v31  ;;  %395 = vmax.xlane.f32.xlu0 %v392_v32  ;;  %v360_v34 = vadd.f32 %v640_v20, %v359_v33  ;;  %v670_v35 = vpop.f32.mrb[3].mxu1  ;;  %v471_v36 = vsel %vm942_vm6, %v953_v30, -1e+30  ;;  %v393_v37 = vsel %vm390_vm7, %v953_v30, -1e+30 }
  0xf3   : > { %v970_v38 = vsel %vm376_vm8, %v360_v34, 0.0 }
  0xf4   : > { %v394_v39 = vsel %vm390_vm7, %v970_v38, -1e+30  ;;  %v472_v46 = vsel %vm942_vm6, %v970_v38, -1e+30 }
  0xf5   : > { %475 = vmax.xlane.f32.xlu1 %v471_v36  ;;  %397 = vmax.xlane.f32.xlu0 %v393_v37 }
  0xf9   : > { %399 = vmax.xlane.f32.xlu0 %v394_v39 }
 0x106   : > { %429 = vperm.xlu1 %730, %v387_v40  }
 0x10a   : > { %731 = vset.pattern.permute.xlu1 %v827_v43 }
 0x10b   : > { %507 = vperm.xlu1 %731, %v503_v42  }
 0x10f   : > { %510 = vperm.xlu1 %731, %v504_v44   ;;  %426 = vperm.xlu0 %729, %v386_v41  }
 0x113   : > { %732 = vset.pattern.permute.xlu1 %v826_v11  ;;  %734 = vset.pattern.permute.xlu0 %v827_v43 }
 0x114   : > { %432 = vperm.xlu1 %732, %v388_v45  }
 0x118   : > { %733 = vset.pattern.permute.xlu1 %v827_v43 }
 0x138   : > { %477 = vmax.xlane.f32.xlu1 %v472_v46 }
 0x149   : > { %513 = vperm.xlu1 %733, %v505_v47  }
 0x17e   : > { %v983_v48 = vpop.xlane.xlu1 %473  ;;  %v985_v49 = vpop.xlane.xlu0 %395 }
 0x17f   : > { %v479_v50 = vsub.f32 %v470_v31, %v983_v48  ;;  %v401_v51 = vsub.f32 %v392_v32, %v985_v49 }
 0x181   : > { %v404_v52 = vmul.f32 1.442695, %v401_v51  ;;  %v482_v55 = vmul.f32 1.442695, %v479_v50 }
 0x182   : > { %v989_v53 = vpop.xlane.xlu1 %475  ;;  %v991_v54 = vpop.xlane.xlu0 %397 }
 0x183   : > { %v402_v56 = vsub.f32 %v393_v37, %v991_v54  ;;  %735 = vpow2.f32 %v404_v52  ;;  %v480_v57 = vsub.f32 %v471_v36, %v989_v53 }
 0x184   : > { %737 = vpow2.f32 %v482_v55 }
 0x185   : > { %v406_v58 = vmul.f32 1.442695, %v402_v56  ;;  %v484_v61 = vmul.f32 1.442695, %v480_v57 }
 0x186   : > { %v995_v59 = vpop.xlane.xlu0 %399  ;;  %v430_v63 = vpop.permute.xlu1 %429 }
 0x187   : > { %v403_v60 = vsub.f32 %v394_v39, %v995_v59  ;;  %739 = vpow2.f32 %v406_v58  ;;  %vm435_vm12 = vcmp.eq.s32.totalorder %v927_v16, %v430_v63 }
 0x188   : > { %v438_v19 = vsel %vm435_vm12, %v953_v30, 0.0 }
 0x189   : > { %v408_v62 = vmul.f32 1.442695, %v403_v60 }
 0x18a   : > { %v508_v1 = vpop.permute.xlu1 %507 }
 0x18b   : > { %741 = vpow2.f32 %v408_v62  ;;  %vm515_vm10 = vcmp.eq.s32.totalorder %v927_v16, %v508_v1 }
 0x18c   : > { %743 = vpow2.f32 %v484_v61  ;;  %v518_v10 = vsel %vm515_vm10, %v949_v29, 0.0 }
 0x18d   : > { %v736_v0 = vpop.eup %735 }
 0x18e   : > { %410 = vadd.xlane.f32.xlu1 %v736_v0  ;;  %v738_v2 = vpop.eup %737  ;;  %v427_v4 = vpop.permute.xlu0 %426 }
 0x18f   : > { %v511_v7 = vpop.permute.xlu1 %510  ;;  %vm434_vm9 = vcmp.eq.s32.totalorder %v927_v16, %v427_v4 }
 0x190   : > { %v437_v8 = vsel %vm434_vm9, %v949_v29, 0.0  ;;  %vm516_vm13 = vcmp.eq.s32.totalorder %v927_v16, %v511_v7 }
 0x191   : > { %v740_v3 = vpop.eup %739  ;;  %v519_v21 = vsel %vm516_vm13, %v953_v30, 0.0 }
 0x192   : > { %488 = vadd.xlane.f32.xlu1 %v738_v2  ;;  %412 = vadd.xlane.f32.xlu0 %v740_v3 }
 0x193   : > { %v433_v9 = vpop.permute.xlu1 %432 }
 0x194   : > { %vm436_vm11 = vcmp.eq.s32.totalorder %v927_v16, %v433_v9 }
 0x195   : > { %v742_v5 = vpop.eup %741  ;;  %v439_v11 = vsel %vm436_vm11, %v970_v38, 0.0 }
 0x196   : > { %v744_v6 = vpop.eup %743  ;;  %414 = vadd.xlane.f32.xlu0 %v742_v5 }
 0x197   : > { %490 = vadd.xlane.f32.xlu1 %v744_v6 }
 0x19a   : > { %440 = vadd.xlane.f32.xlu0 %v437_v8 }
 0x19e   : > { %521 = vadd.xlane.f32.xlu0 %v518_v10 }
 0x1a2   : > { %444 = vadd.xlane.f32.xlu0 %v439_v11 }
 0x1c5   : > { %v1004_v12 = vpop.xlane.xlu1 %477 }
 0x1c6   : > { %v481_v13 = vsub.f32 %v472_v46, %v1004_v12 }
 0x1c8   : > { %v486_v14 = vmul.f32 1.442695, %v481_v13 }
 0x1c9   : > { %v514_v20 = vpop.permute.xlu1 %513 }
 0x1ca   : > { %745 = vpow2.f32 %v486_v14  ;;  %vm517_vm14 = vcmp.eq.s32.totalorder %v927_v16, %v514_v20 }
 0x1cb   : > { %v520_v22 = vsel %vm517_vm14, %v970_v38, 0.0 }
 0x1d4   : > { %v746_v15 = vpop.eup %745 }
 0x1d5   : > { %492 = vadd.xlane.f32.xlu1 %v746_v15 }
 0x1d9   : > { %442 = vadd.xlane.f32.xlu1 %v438_v19 }
 0x1dd   : > { %523 = vadd.xlane.f32.xlu1 %v519_v21 }
 0x1e1   : > { %525 = vadd.xlane.f32.xlu1 %v520_v22 }
 0x21b   : > { %v411_v25 = vpop.xlane.xlu1 %410 }
 0x21c   : > { %747 = vlog2.f32 %v411_v25 }
 0x21f   : > { %v413_v24 = vpop.xlane.xlu0 %412  ;;  %v489_v27 = vpop.xlane.xlu1 %488 }
 0x223   : > { %v415_v26 = vpop.xlane.xlu0 %414 }
 0x224   : > { %749 = vlog2.f32 %v415_v26  ;;  %v491_v28 = vpop.xlane.xlu1 %490 }
 0x225   : > { %751 = vlog2.f32 %v413_v24 }
 0x226   : > { %753 = vlog2.f32 %v489_v27  ;;  %v748_v29 = vpop.eup %747 }
 0x227   : > { %755 = vlog2.f32 %v491_v28  ;;  %v441_v31 = vpop.xlane.xlu0 %440  ;;  %v417_v30 = vmul.f32 0.6931472, %v748_v29 }
 0x229   : > { %v422_v36 = vadd.f32 %v417_v30, %v985_v49 }
 0x22b   : > { %v522_v35 = vpop.xlane.xlu0 %521  ;;  %v446_v42 = vsub.f32 %v422_v36, %v441_v31 }
 0x22d   : > { %v449_v51 = vsel %vm374_vm4, %v446_v42, 0.0 }
 0x22e   : > { %v750_v32 = vpop.eup %749  ;;  %v453_v58 = vsel %vm452_vm15, %v449_v51, 0.0 }
 0x22f   : > { %v421_v33 = vmul.f32 0.6931472, %v750_v32  ;;  %v752_v34 = vpop.eup %751  ;;  %v445_v44 = vpop.xlane.xlu0 %444 }
 0x230   : > { %v754_v37 = vpop.eup %753  ;;  %v419_v38 = vmul.f32 0.6931472, %v752_v34 }
 0x231   : > { %v424_v39 = vadd.f32 %v421_v33, %v995_v59  ;;  %v756_v40 = vpop.eup %755  ;;  %v495_v43 = vmul.f32 0.6931472, %v754_v37 }
 0x232   : > { %v497_v45 = vmul.f32 0.6931472, %v756_v40  ;;  %v423_v47 = vadd.f32 %v419_v38, %v991_v54 }
 0x233   : > { %v448_v46 = vsub.f32 %v424_v39, %v445_v44  ;;  %v500_v52 = vadd.f32 %v495_v43, %v983_v48 }
 0x234   : > { %v501_v57 = vadd.f32 %v497_v45, %v989_v53 }
 0x235   : > { %v451_v55 = vsel %vm376_vm8, %v448_v46, 0.0  ;;  %v527_v62 = vsub.f32 %v500_v52, %v522_v35 }
 0x236   : > { %v456_v63 = vsel %vm452_vm15, %v451_v55, 0.0 }
 0x237   : > { %v530_v53 = vsel %vm374_vm4, %v527_v62, 0.0 }
 0x238   : > { %v533_v7 = vsel %vm452_vm15, %v530_v53, 0.0 }
 0x262   : > { %v493_v41 = vpop.xlane.xlu1 %492 }
 0x263   : > { %757 = vlog2.f32 %v493_v41 }
 0x266   : > { %v443_v50 = vpop.xlane.xlu1 %442 }
 0x267   : > { %v447_v49 = vsub.f32 %v423_v47, %v443_v50 }
 0x269   : > { %v450_v56 = vsel %vm375_vm5, %v447_v49, 0.0 }
 0x26a   : > { %v454_v54 = vsel %vm452_vm15, %v450_v56, 0.0  ;;  %v524_v59 = vpop.xlane.xlu1 %523 }
 0x26b   : > { %v528_v60 = vsub.f32 %v501_v57, %v524_v59  ;;  %v455_v61 = vadd.f32 %v454_v54, %v453_v58 }
 0x26d   : > { %v758_v0 = vpop.eup %757  ;;  %v457_v48 = vadd.f32 %v456_v63, %v455_v61  ;;  %v531_v2 = vsel %vm375_vm5, %v528_v60, 0.0 }
 0x26e   : > { %v499_v1 = vmul.f32 0.6931472, %v758_v0  ;;  %v534_v4 = vsel %vm452_vm15, %v531_v2, 0.0  ;;  %v526_v5 = vpop.xlane.xlu1 %525 }
 0x26f   : > { %458 = vadd.xlane.f32.xlu0 %v457_v48  ;;  %v535_v9 = vadd.f32 %v534_v4, %v533_v7 }
 0x270   : > { %v502_v3 = vadd.f32 %v499_v1, %v1004_v12 }
 0x272   : > { %v529_v6 = vsub.f32 %v502_v3, %v526_v5 }
 0x274   : > { %v532_v8 = vsel %vm376_vm8, %v529_v6, 0.0 }
 0x275   : > { %v536_v10 = vsel %vm452_vm15, %v532_v8, 0.0 }
 0x276   : > { %v537_v18 = vadd.f32 %v536_v10, %v535_v9 }
 0x278   : > { %538 = vadd.xlane.f32.xlu1 %v537_v18 }
 0x2fc   : > { %v459_v11 = vpop.xlane.xlu0 %458 }
 0x2fd   : > { %v460_v17 = vrot.slane %v459_v11, 4 }
 0x2ff   : > { %v461_v13 = vadd.f32 %v460_v17, %v459_v11 }
 0x301   : > { %v462_v12 = vrot.slane %v461_v13, 2 }
 0x303   : > { %v463_v14 = vadd.f32 %v462_v12, %v461_v13 }
 0x305   : > { %v539_v15 = vpop.xlane.xlu1 %538  ;;  %v464_v19 = vrot.slane %v463_v14, 1 }
 0x306   : > { %v540_v20 = vrot.slane %v539_v15, 4 }
 0x307   : > { %v465_v21 = vadd.f32 %v464_v19, %v463_v14 }
 0x308   : > { %v541_v22 = vadd.f32 %v540_v20, %v539_v15 }
 0x309   : > { %681 = vpush %v465_v21 }
 0x30a   : > { %v542_v23 = vrot.slane %v541_v22, 2 }
 0x30c   : > { %v543_v24 = vadd.f32 %v542_v23, %v541_v22 }
 0x30e   : > { %v544_v25 = vrot.slane %v543_v24, 1 }
 0x310   : > { %v545_v26 = vadd.f32 %v544_v25, %v543_v24 }
 0x312   : > { %683 = vpush %v545_v26 }
 0x33a   : > { %s682_s5 = spop %681 }
 0x33b   : > { %v551_v28 = vstv %s682_s5 }
 0x343   : > { %s684_s8 = spop %683 }
 0x344   : > { %v549_v27 = vstv %s684_s8 }
 0x345   : > { %v550_v29 = vsel %vm548_vm0, %v549_v27, 0.0 }
 0x346   : > { %v552_v31 = vsel %vm547_vm1, %v551_v28, %v550_v29 }
 0x347   : > { %553 = vst [vmem:[%s230_s6] sm:$0x1] %v552_v31 }
 0x348   : > { %772 = shalt.err (!%p769_p3)
}
 0x349   : > { %s773_s22 = scalar_lea.hbm %s1044_s11, 16  ;;  %s777_s28 = scalar_lea.hbm %s1090_s4, 48 }
 0x34a   : > { %p774_p4 = scmp.ne.s32.totalorder %s1044_s11, %s773_s22  ;;  %p778_p9 = scmp.lt.u32.totalorder %s1044_s11, %s1090_s4 }
 0x34b   : > { %p779_p10 = scmp.lt.u32.totalorder %s777_s28, %s773_s22  ;;  %p781_p12 = scmp.lt.u32.totalorder %s773_s22, %s1044_s11 }
 0x34c   : > { %p775_p7 = pnand %p774_p4, %p892_p5 }
 0x34d   : > { %p780_p11 = por %p779_p10, %p778_p9 }
 0x34e   : > { %p776_p8 = pneg %p775_p7 }
 0x34f   : > { %p782_p13 = por %p781_p12, %p780_p11 }
 0x351   : > { %p783_p0 = pnand %p782_p13, %p776_p8 }
 0x353   : > { %786 = shalt.err (!%p783_p0)
}
 0x354   : > { %685 = dma.vmem_to_hbm [thread:$0]  (%p892_p5), %s1046_s7, 16, %s1044_s11, %s555_s19  }
 0x355 PF: > { %p691_p1 = scmp.ge.s32.totalorder %s821_s18, 2  ;;  %s579_s5 = sand.u32 1, %s809_s15  }
 0x356   : > { %s580_s6 = scalar_lea.sflag [#allocation3], %s579_s5 }
 0x357   : > { %p688_p2 = pnand %p691_p1, %p896_p6 }
 0x359   : > { %804 = dma.done.wait (!%p688_p2), %s580_s6, 16  }
 0x35a   : > { %806 = vsyncadd (!%p688_p2), %s580_s6, 4294967280  ;;  %p14_p3 = scmp.ge.s32.totalorder %s879_s21, 5   ;;  %s1095_s15 = smov %s813_s16 }
 0x35b   : > { %s1096_s16 = smov %s817_s17  ;;  %s1097_s17 = smov %s890_s24 }
 0x35c   : > { %s1098_s18 = smov %s879_s21  ;;  %16 = sbr.rel (!%p14_p3) target bundleno = 3 (0x3), region = 74 }
 0x363   :  { %584 = vsyncpa [#allocation3], 1 }
 0x364   :  { %586 = vsyncpa [#allocation3 + $0x1], 1 }

</bundles_post_ra>
